<compile_context>
chip_gen: v7x
topology: tpu7x:2x2x1
jax: 0.10.0
libtpu: 0.0.40
codegen_flags: <defaults>
</compile_context>

<pallas_src>
import functools

import numpy as np
import jax
import jax.numpy as jnp
from jax import lax
from jax.experimental import pallas as pl
from jax.experimental.pallas import tpu as pltpu


def _inception_kernel(x_ref, masks_ref, wf_ref, out_ref, patch_ref, *,
                      W, HW, pad_left, nb):
    f32 = jnp.float32
    out_dtype = out_ref.dtype

    # Column masks kill reads that crossed a row boundary (horizontal padding);
    # the interior mask implements the VALID max-pool + padded-1x1 composition.
    cmask = {-2: masks_ref[0:1, :], -1: masks_ref[1:2, :],
             1: masks_ref[2:3, :], 2: masks_ref[3:4, :]}
    interior = masks_ref[4:5, :]

    wf = wf_ref[...]                                   # (64, 32), loaded once

    for b in range(nb):
        mp = None
        for r in range(-2, 3):
            for c in range(-2, 3):
                k = (r + 2) * 5 + (c + 2)
                start = pad_left + r * W + c           # static slice start
                raw = x_ref[b, :, start:start + HW]    # (1, HW) f32
                tap = raw * cmask[c] if c != 0 else raw
                patch_ref[b, k:k + 1, :] = tap
                if -1 <= r <= 1 and -1 <= c <= 1:
                    # Max-pool over the RAW taps: interior positions never need
                    # the column mask; non-interior lanes are zeroed below.
                    mp = raw if mp is None else jnp.maximum(mp, raw)

        patch_ref[b, 25:26, :] = mp * interior              # masked 3x3 maxpool
        patch_ref[b, 26:27, :] = jnp.ones((1, HW), f32)     # bias row
        patch_ref[b, 27:32, :] = jnp.zeros((5, HW), f32)    # keep K-pad rows finite

        # One fused MXU matmul -> all four branches (+biases) at once.
        out_ref[b] = jnp.dot(wf, patch_ref[b],
                             preferred_element_type=jnp.float32
                             ).astype(out_dtype)


def _build_fused_weight(params):
    """(64, 32) matrix: rows = output channels of [1x1 | 3x3 | 5x5 | maxpool-1x1]."""
    f32 = jnp.float32
    w0 = params["w1x1_1"].reshape(16).astype(f32)
    w3 = params["w3x3"].reshape(16, 9).astype(f32)
    b3 = params["b3x3"].reshape(16).astype(f32)
    w5 = params["w5x5"].reshape(16, 25).astype(f32)
    b5 = params["b5x5"].reshape(16).astype(f32)
    wmp = params["w1x1_2"].reshape(16).astype(f32)
    bmp = params["b1x1_2"].reshape(16).astype(f32)

    K = 32
    idx3 = np.array([(r + 2) * 5 + (c + 2)
                     for r in (-1, 0, 1) for c in (-1, 0, 1)], dtype=np.int32)

    row0 = jnp.zeros((16, K), f32).at[:, 12].set(w0)                    # 1x1, no bias
    row1 = jnp.zeros((16, K), f32).at[:, idx3].set(w3).at[:, 26].set(b3)  # 3x3 + b
    row2 = jnp.zeros((16, K), f32).at[:, :25].set(w5).at[:, 26].set(b5)   # 5x5 + b
    row3 = jnp.zeros((16, K), f32).at[:, 25].set(wmp).at[:, 26].set(bmp)  # maxpool 1x1 + b
    return jnp.concatenate([row0, row1, row2, row3], axis=0)            # (64, 32)


def inception_forward(x, params, nb=None, out_dtype=None):
    """x: (N, 1, H, W) float -> (N, 64, H, W); same semantics as the torch module."""
    N, C, H, W = x.shape
    assert C == 1, "InceptionBlock takes a single input channel"
    assert H >= 3 and W >= 3, "maxpool(3x3, VALID) needs H, W >= 3"
    HW = H * W
    out_dtype = jnp.dtype(x.dtype if out_dtype is None else out_dtype)
    dsize = out_dtype.itemsize
    f32 = jnp.float32

    # Lane-aligned left margin; both margins cover the largest tap shift (2W+2).
    halo = 2 * W + 2
    pad_left = ((halo + 127) // 128) * 128
    L = ((pad_left + HW + halo + 127) // 128) * 128
    pad_right = L - pad_left - HW

    # Pre-padded, f32, flattened input (N, 1, L): zero margins implement the
    # vertical conv zero padding, done once off the per-step critical path.
    x_pad = jnp.pad(x.reshape(N, HW).astype(f32),
                    ((0, 0), (pad_left, pad_right)))[:, None, :]

    # Constant masks (numpy -> literal constants).
    col = np.arange(HW) % W
    row = np.arange(HW) // W

    def _colmask(c):
        return ((col + c >= 0) & (col + c < W)).astype(np.float32)

    interior = ((row >= 1) & (row <= H - 2) &
                (col >= 1) & (col <= W - 2)).astype(np.float32)
    masks = jnp.asarray(np.stack([_colmask(-2), _colmask(-1),
                                  _colmask(1), _colmask(2), interior], axis=0))

    wf = _build_fused_weight(params)                   # (64, 32)

    # --- VMEM budget / nb selection -----------------------------------------
    try:
        vmem_cap = int(pltpu.get_tpu_info().vmem_capacity_bytes)
    except Exception:                                  # noqa: BLE001 - best effort
        vmem_cap = 64 << 20                            # v7x per-TC VMEM (worst case)
    per_b = 2 * L * 4 + 2 * 64 * HW * dsize + 32 * HW * 4   # in/out dbl-buf + patch
    fixed = 5 * HW * 4 + 64 * 32 * 4
    budget = vmem_cap // 3
    if nb is None:
        nb = 1
        for cand in (4, 2):
            # Keep >= 2 grid steps so both v7x TensorCores get work, and stay
            # inside the VMEM budget. (MXU rewrite removed the big accumulator
            # vreg pressure, so nb is VMEM/grid-length limited, not vreg-limited.)
            if N % cand == 0 and N // cand >= 2 and fixed + cand * per_b <= budget:
                nb = cand
                break
    assert N % nb == 0
    # TODO(synk): for very large H*W, add a spatial grid axis (tile the flat HW
    # dim with halo handling) so the per-step VMEM footprint stays bounded.

    est = fixed + nb * per_b
    vmem_limit = int(min(max(32 << 20, 4 * est), vmem_cap * 3 // 4))

    cost = pl.CostEstimate(
        flops=int(2 * N * 64 * 32 * HW),
        transcendentals=0,
        bytes_accessed=int(N * L * 4 + N * 64 * HW * dsize + fixed))

    kernel = functools.partial(_inception_kernel, W=W, HW=HW,
                               pad_left=pad_left, nb=nb)

    out_flat = pl.pallas_call(
        kernel,
        out_shape=jax.ShapeDtypeStruct((N, 64, HW), out_dtype),
        grid=(N // nb,),
        in_specs=[
            pl.BlockSpec((nb, 1, L), lambda i: (i, 0, 0)),   # pre-padded images
            pl.BlockSpec((5, HW), lambda i: (0, 0)),         # masks (resident)
            pl.BlockSpec((64, 32), lambda i: (0, 0)),        # fused weights (resident)
        ],
        out_specs=pl.BlockSpec((nb, 64, HW), lambda i: (i, 0, 0)),
        scratch_shapes=[pltpu.VMEM((nb, 32, HW), f32)],      # im2col patch matrix
        compiler_params=pltpu.CompilerParams(
            dimension_semantics=("parallel",),
            vmem_limit_bytes=vmem_limit),
        cost_estimate=cost,
    )(x_pad, masks, wf)

    # Row-major reshape back to NCHW is free (no data movement).
    return out_flat.reshape(N, 64, H, W)


def reference_forward(x, params):
    """Pure-JAX reference identical to the PyTorch forward (NCHW)."""
    dn = ("NCHW", "OIHW", "NCHW")
    hp = lax.Precision.HIGHEST
    x0 = lax.conv_general_dilated(x, params["w1x1_1"], (1, 1), "VALID",
                                  dimension_numbers=dn, precision=hp)
    x1 = lax.conv_general_dilated(x, params["w3x3"], (1, 1), ((1, 1), (1, 1)),
                                  dimension_numbers=dn, precision=hp)
    x1 = x1 + params["b3x3"].reshape(1, 16, 1, 1)
    x2 = lax.conv_general_dilated(x, params["w5x5"], (1, 1), ((2, 2), (2, 2)),
                                  dimension_numbers=dn, precision=hp)
    x2 = x2 + params["b5x5"].reshape(1, 16, 1, 1)
    mp = lax.reduce_window(x, -jnp.inf, lax.max,
                           (1, 1, 3, 3), (1, 1, 1, 1), "VALID")
    x3 = lax.conv_general_dilated(mp, params["w1x1_2"], (1, 1),
                                  ((1, 1), (1, 1)),
                                  dimension_numbers=dn, precision=hp)
    x3 = x3 + params["b1x1_2"].reshape(1, 16, 1, 1)
    return jnp.concatenate([x0, x1, x2, x3], axis=1)


def init_params(key):
    ks = jax.random.split(key, 7)
    s = 0.1
    return {
        "w1x1_1": s * jax.random.normal(ks[0], (16, 1, 1, 1), jnp.float32),
        "w3x3":   s * jax.random.normal(ks[1], (16, 1, 3, 3), jnp.float32),
        "b3x3":   s * jax.random.normal(ks[2], (16,), jnp.float32),
        "w5x5":   s * jax.random.normal(ks[3], (16, 1, 5, 5), jnp.float32),
        "b5x5":   s * jax.random.normal(ks[4], (16,), jnp.float32),
        "w1x1_2": s * jax.random.normal(ks[5], (16, 1, 1, 1), jnp.float32),
        "b1x1_2": s * jax.random.normal(ks[6], (16,), jnp.float32),
    }


if __name__ == "__main__":
    key = jax.random.PRNGKey(0)
    k_x, k_p = jax.random.split(key)
    params = init_params(k_p)
    x = jax.random.normal(k_x, (2, 1, 16, 16), jnp.float32)   # NCHW, 1 in-channel

    out = jax.block_until_ready(inception_forward(x, params))
    ref = jax.block_until_ready(reference_forward(x, params))
    assert out.shape == (2, 64, 16, 16), out.shape
    # Tolerance sized for the MXU f32 contraction (covers a worst-case bf16-pass
    # decomposition of the f32 matmul); real indexing/mask bugs would be >> 0.05.
    err = float(jnp.max(jnp.abs(out - ref)))
    assert err < 2e-3, err

    print("KERNEL_OK")
</pallas_src>

<mosaic_0001>
module attributes {stable_mosaic.version = 11 : i64} {
  func.func @_inception_kernel(%arg0: i32, %arg1: memref<1x1x512xf32, #tpu.memory_space<vmem>>, %arg2: memref<5x256xf32, #tpu.memory_space<vmem>>, %arg3: memref<64x32xf32, #tpu.memory_space<vmem>>, %arg4: memref<1x64x256xf32, #tpu.memory_space<vmem>>, %arg5: memref<1x32x256xf32, #tpu.memory_space<vmem>>) attributes {dimension_semantics = [#tpu.dimension_semantics<parallel>], iteration_bounds = array<i64: 2>, scalar_prefetch = 0 : i64, scratch_operands = 1 : i64, tpu.core_type = #tpu.core_type<tc>, window_params = [{transform_indices = @transform_0, window_bounds = array<i64: 1, 1, 512>}, {pipeline_mode = #tpu.pipeline_mode<synchronous>, transform_indices = @transform_1, window_bounds = array<i64: 5, 256>}, {pipeline_mode = #tpu.pipeline_mode<synchronous>, transform_indices = @transform_2, window_bounds = array<i64: 64, 32>}, {transform_indices = @transform_3, window_bounds = array<i64: 1, 64, 256>}]} {
    %c0 = arith.constant 0 : index
    %c0_0 = arith.constant 0 : index
    %0 = vector.load %arg2[%c0, %c0_0] : memref<5x256xf32, #tpu.memory_space<vmem>>, vector<1x256xf32>
    %c1 = arith.constant 1 : index
    %c0_1 = arith.constant 0 : index
    %1 = vector.load %arg2[%c1, %c0_1] : memref<5x256xf32, #tpu.memory_space<vmem>>, vector<1x256xf32>
    %c2 = arith.constant 2 : index
    %c0_2 = arith.constant 0 : index
    %2 = vector.load %arg2[%c2, %c0_2] : memref<5x256xf32, #tpu.memory_space<vmem>>, vector<1x256xf32>
    %c3 = arith.constant 3 : index
    %c0_3 = arith.constant 0 : index
    %3 = vector.load %arg2[%c3, %c0_3] : memref<5x256xf32, #tpu.memory_space<vmem>>, vector<1x256xf32>
    %c4 = arith.constant 4 : index
    %c0_4 = arith.constant 0 : index
    %4 = vector.load %arg2[%c4, %c0_4] : memref<5x256xf32, #tpu.memory_space<vmem>>, vector<1x256xf32>
    %c0_5 = arith.constant 0 : index
    %c0_6 = arith.constant 0 : index
    %5 = vector.load %arg3[%c0_5, %c0_6] : memref<64x32xf32, #tpu.memory_space<vmem>>, vector<64x32xf32>
    %c0_7 = arith.constant 0 : index
    %c0_8 = arith.constant 0 : index
    %c94 = arith.constant 94 : index
    %6 = vector.load %arg1[%c0_7, %c0_8, %c94] : memref<1x1x512xf32, #tpu.memory_space<vmem>>, vector<1x1x256xf32>
    %7 = vector.shape_cast %6 : vector<1x1x256xf32> to vector<1x256xf32>
    %8 = arith.mulf %7, %0 : vector<1x256xf32>
    %c0_9 = arith.constant 0 : index
    %c0_10 = arith.constant 0 : index
    %c0_11 = arith.constant 0 : index
    %9 = vector.load %arg5[%c0_9, %c0_10, %c0_11] : memref<1x32x256xf32, #tpu.memory_space<vmem>>, vector<1x1x256xf32>
    %10 = vector.shape_cast %9 : vector<1x1x256xf32> to vector<1x256xf32>
    %11 = vector.shape_cast %8 : vector<1x256xf32> to vector<1x1x256xf32>
    tpu.vector_store %arg5[%c0_9, %c0_10, %c0_11], %11 {strides = array<i32>} : memref<1x32x256xf32, #tpu.memory_space<vmem>>, vector<1x1x256xf32>,
    %c0_12 = arith.constant 0 : index
    %c0_13 = arith.constant 0 : index
    %c95 = arith.constant 95 : index
    %12 = vector.load %arg1[%c0_12, %c0_13, %c95] : memref<1x1x512xf32, #tpu.memory_space<vmem>>, vector<1x1x256xf32>
    %13 = vector.shape_cast %12 : vector<1x1x256xf32> to vector<1x256xf32>
    %14 = arith.mulf %13, %1 : vector<1x256xf32>
    %c0_14 = arith.constant 0 : index
    %c1_15 = arith.constant 1 : index
    %c0_16 = arith.constant 0 : index
    %15 = vector.load %arg5[%c0_14, %c1_15, %c0_16] : memref<1x32x256xf32, #tpu.memory_space<vmem>>, vector<1x1x256xf32>
    %16 = vector.shape_cast %15 : vector<1x1x256xf32> to vector<1x256xf32>
    %17 = vector.shape_cast %14 : vector<1x256xf32> to vector<1x1x256xf32>
    tpu.vector_store %arg5[%c0_14, %c1_15, %c0_16], %17 {strides = array<i32>} : memref<1x32x256xf32, #tpu.memory_space<vmem>>, vector<1x1x256xf32>,
    %c0_17 = arith.constant 0 : index
    %c0_18 = arith.constant 0 : index
    %c96 = arith.constant 96 : index
    %18 = vector.load %arg1[%c0_17, %c0_18, %c96] : memref<1x1x512xf32, #tpu.memory_space<vmem>>, vector<1x1x256xf32>
    %19 = vector.shape_cast %18 : vector<1x1x256xf32> to vector<1x256xf32>
    %c0_19 = arith.constant 0 : index
    %c2_20 = arith.constant 2 : index
    %c0_21 = arith.constant 0 : index
    %20 = vector.load %arg5[%c0_19, %c2_20, %c0_21] : memref<1x32x256xf32, #tpu.memory_space<vmem>>, vector<1x1x256xf32>
    %21 = vector.shape_cast %20 : vector<1x1x256xf32> to vector<1x256xf32>
    %22 = vector.shape_cast %19 : vector<1x256xf32> to vector<1x1x256xf32>
    tpu.vector_store %arg5[%c0_19, %c2_20, %c0_21], %22 {strides = array<i32>} : memref<1x32x256xf32, #tpu.memory_space<vmem>>, vector<1x1x256xf32>,
    %c0_22 = arith.constant 0 : index
    %c0_23 = arith.constant 0 : index
    %c97 = arith.constant 97 : index
    %23 = vector.load %arg1[%c0_22, %c0_23, %c97] : memref<1x1x512xf32, #tpu.memory_space<vmem>>, vector<1x1x256xf32>
    %24 = vector.shape_cast %23 : vector<1x1x256xf32> to vector<1x256xf32>
    %25 = arith.mulf %24, %2 : vector<1x256xf32>
    %c0_24 = arith.constant 0 : index
    %c3_25 = arith.constant 3 : index
    %c0_26 = arith.constant 0 : index
    %26 = vector.load %arg5[%c0_24, %c3_25, %c0_26] : memref<1x32x256xf32, #tpu.memory_space<vmem>>, vector<1x1x256xf32>
    %27 = vector.shape_cast %26 : vector<1x1x256xf32> to vector<1x256xf32>
    %28 = vector.shape_cast %25 : vector<1x256xf32> to vector<1x1x256xf32>
    tpu.vector_store %arg5[%c0_24, %c3_25, %c0_26], %28 {strides = array<i32>} : memref<1x32x256xf32, #tpu.memory_space<vmem>>, vector<1x1x256xf32>,
    %c0_27 = arith.constant 0 : index
    %c0_28 = arith.constant 0 : index
    %c98 = arith.constant 98 : index
    %29 = vector.load %arg1[%c0_27, %c0_28, %c98] : memref<1x1x512xf32, #tpu.memory_space<vmem>>, vector<1x1x256xf32>
    %30 = vector.shape_cast %29 : vector<1x1x256xf32> to vector<1x256xf32>
    %31 = arith.mulf %30, %3 : vector<1x256xf32>
    %c0_29 = arith.constant 0 : index
    %c4_30 = arith.constant 4 : index
    %c0_31 = arith.constant 0 : index
    %32 = vector.load %arg5[%c0_29, %c4_30, %c0_31] : memref<1x32x256xf32, #tpu.memory_space<vmem>>, vector<1x1x256xf32>
    %33 = vector.shape_cast %32 : vector<1x1x256xf32> to vector<1x256xf32>
    %34 = vector.shape_cast %31 : vector<1x256xf32> to vector<1x1x256xf32>
    tpu.vector_store %arg5[%c0_29, %c4_30, %c0_31], %34 {strides = array<i32>} : memref<1x32x256xf32, #tpu.memory_space<vmem>>, vector<1x1x256xf32>,
    %c0_32 = arith.constant 0 : index
    %c0_33 = arith.constant 0 : index
    %c110 = arith.constant 110 : index
    %35 = vector.load %arg1[%c0_32, %c0_33, %c110] : memref<1x1x512xf32, #tpu.memory_space<vmem>>, vector<1x1x256xf32>
    %36 = vector.shape_cast %35 : vector<1x1x256xf32> to vector<1x256xf32>
    %37 = arith.mulf %36, %0 : vector<1x256xf32>
    %c0_34 = arith.constant 0 : index
    %c5 = arith.constant 5 : index
    %c0_35 = arith.constant 0 : index
    %38 = vector.load %arg5[%c0_34, %c5, %c0_35] : memref<1x32x256xf32, #tpu.memory_space<vmem>>, vector<1x1x256xf32>
    %39 = vector.shape_cast %38 : vector<1x1x256xf32> to vector<1x256xf32>
    %40 = vector.shape_cast %37 : vector<1x256xf32> to vector<1x1x256xf32>
    tpu.vector_store %arg5[%c0_34, %c5, %c0_35], %40 {strides = array<i32>} : memref<1x32x256xf32, #tpu.memory_space<vmem>>, vector<1x1x256xf32>,
    %c0_36 = arith.constant 0 : index
    %c0_37 = arith.constant 0 : index
    %c111 = arith.constant 111 : index
    %41 = vector.load %arg1[%c0_36, %c0_37, %c111] : memref<1x1x512xf32, #tpu.memory_space<vmem>>, vector<1x1x256xf32>
    %42 = vector.shape_cast %41 : vector<1x1x256xf32> to vector<1x256xf32>
    %43 = arith.mulf %42, %1 : vector<1x256xf32>
    %c0_38 = arith.constant 0 : index
    %c6 = arith.constant 6 : index
    %c0_39 = arith.constant 0 : index
    %44 = vector.load %arg5[%c0_38, %c6, %c0_39] : memref<1x32x256xf32, #tpu.memory_space<vmem>>, vector<1x1x256xf32>
    %45 = vector.shape_cast %44 : vector<1x1x256xf32> to vector<1x256xf32>
    %46 = vector.shape_cast %43 : vector<1x256xf32> to vector<1x1x256xf32>
    tpu.vector_store %arg5[%c0_38, %c6, %c0_39], %46 {strides = array<i32>} : memref<1x32x256xf32, #tpu.memory_space<vmem>>, vector<1x1x256xf32>,
    %c0_40 = arith.constant 0 : index
    %c0_41 = arith.constant 0 : index
    %c112 = arith.constant 112 : index
    %47 = vector.load %arg1[%c0_40, %c0_41, %c112] : memref<1x1x512xf32, #tpu.memory_space<vmem>>, vector<1x1x256xf32>
    %48 = vector.shape_cast %47 : vector<1x1x256xf32> to vector<1x256xf32>
    %c0_42 = arith.constant 0 : index
    %c7 = arith.constant 7 : index
    %c0_43 = arith.constant 0 : index
    %49 = vector.load %arg5[%c0_42, %c7, %c0_43] : memref<1x32x256xf32, #tpu.memory_space<vmem>>, vector<1x1x256xf32>
    %50 = vector.shape_cast %49 : vector<1x1x256xf32> to vector<1x256xf32>
    %51 = vector.shape_cast %48 : vector<1x256xf32> to vector<1x1x256xf32>
    tpu.vector_store %arg5[%c0_42, %c7, %c0_43], %51 {strides = array<i32>} : memref<1x32x256xf32, #tpu.memory_space<vmem>>, vector<1x1x256xf32>,
    %52 = arith.maximumf %42, %48 : vector<1x256xf32>
    %c0_44 = arith.constant 0 : index
    %c0_45 = arith.constant 0 : index
    %c113 = arith.constant 113 : index
    %53 = vector.load %arg1[%c0_44, %c0_45, %c113] : memref<1x1x512xf32, #tpu.memory_space<vmem>>, vector<1x1x256xf32>
    %54 = vector.shape_cast %53 : vector<1x1x256xf32> to vector<1x256xf32>
    %55 = arith.mulf %54, %2 : vector<1x256xf32>
    %c0_46 = arith.constant 0 : index
    %c8 = arith.constant 8 : index
    %c0_47 = arith.constant 0 : index
    %56 = vector.load %arg5[%c0_46, %c8, %c0_47] : memref<1x32x256xf32, #tpu.memory_space<vmem>>, vector<1x1x256xf32>
    %57 = vector.shape_cast %56 : vector<1x1x256xf32> to vector<1x256xf32>
    %58 = vector.shape_cast %55 : vector<1x256xf32> to vector<1x1x256xf32>
    tpu.vector_store %arg5[%c0_46, %c8, %c0_47], %58 {strides = array<i32>} : memref<1x32x256xf32, #tpu.memory_space<vmem>>, vector<1x1x256xf32>,
    %59 = arith.maximumf %52, %54 : vector<1x256xf32>
    %c0_48 = arith.constant 0 : index
    %c0_49 = arith.constant 0 : index
    %c114 = arith.constant 114 : index
    %60 = vector.load %arg1[%c0_48, %c0_49, %c114] : memref<1x1x512xf32, #tpu.memory_space<vmem>>, vector<1x1x256xf32>
    %61 = vector.shape_cast %60 : vector<1x1x256xf32> to vector<1x256xf32>
    %62 = arith.mulf %61, %3 : vector<1x256xf32>
    %c0_50 = arith.constant 0 : index
    %c9 = arith.constant 9 : index
    %c0_51 = arith.constant 0 : index
    %63 = vector.load %arg5[%c0_50, %c9, %c0_51] : memref<1x32x256xf32, #tpu.memory_space<vmem>>, vector<1x1x256xf32>
    %64 = vector.shape_cast %63 : vector<1x1x256xf32> to vector<1x256xf32>
    %65 = vector.shape_cast %62 : vector<1x256xf32> to vector<1x1x256xf32>
    tpu.vector_store %arg5[%c0_50, %c9, %c0_51], %65 {strides = array<i32>} : memref<1x32x256xf32, #tpu.memory_space<vmem>>, vector<1x1x256xf32>,
    %c0_52 = arith.constant 0 : index
    %c0_53 = arith.constant 0 : index
    %c126 = arith.constant 126 : index
    %66 = vector.load %arg1[%c0_52, %c0_53, %c126] : memref<1x1x512xf32, #tpu.memory_space<vmem>>, vector<1x1x256xf32>
    %67 = vector.shape_cast %66 : vector<1x1x256xf32> to vector<1x256xf32>
    %68 = arith.mulf %67, %0 : vector<1x256xf32>
    %c0_54 = arith.constant 0 : index
    %c10 = arith.constant 10 : index
    %c0_55 = arith.constant 0 : index
    %69 = vector.load %arg5[%c0_54, %c10, %c0_55] : memref<1x32x256xf32, #tpu.memory_space<vmem>>, vector<1x1x256xf32>
    %70 = vector.shape_cast %69 : vector<1x1x256xf32> to vector<1x256xf32>
    %71 = vector.shape_cast %68 : vector<1x256xf32> to vector<1x1x256xf32>
    tpu.vector_store %arg5[%c0_54, %c10, %c0_55], %71 {strides = array<i32>} : memref<1x32x256xf32, #tpu.memory_space<vmem>>, vector<1x1x256xf32>,
    %c0_56 = arith.constant 0 : index
    %c0_57 = arith.constant 0 : index
    %c127 = arith.constant 127 : index
    %72 = vector.load %arg1[%c0_56, %c0_57, %c127] : memref<1x1x512xf32, #tpu.memory_space<vmem>>, vector<1x1x256xf32>
    %73 = vector.shape_cast %72 : vector<1x1x256xf32> to vector<1x256xf32>
    %74 = arith.mulf %73, %1 : vector<1x256xf32>
    %c0_58 = arith.constant 0 : index
    %c11 = arith.constant 11 : index
    %c0_59 = arith.constant 0 : index
    %75 = vector.load %arg5[%c0_58, %c11, %c0_59] : memref<1x32x256xf32, #tpu.memory_space<vmem>>, vector<1x1x256xf32>
    %76 = vector.shape_cast %75 : vector<1x1x256xf32> to vector<1x256xf32>
    %77 = vector.shape_cast %74 : vector<1x256xf32> to vector<1x1x256xf32>
    tpu.vector_store %arg5[%c0_58, %c11, %c0_59], %77 {strides = array<i32>} : memref<1x32x256xf32, #tpu.memory_space<vmem>>, vector<1x1x256xf32>,
    %78 = arith.maximumf %59, %73 : vector<1x256xf32>
    %c0_60 = arith.constant 0 : index
    %c0_61 = arith.constant 0 : index
    %c128 = arith.constant 128 : index
    %79 = vector.load %arg1[%c0_60, %c0_61, %c128] : memref<1x1x512xf32, #tpu.memory_space<vmem>>, vector<1x1x256xf32>
    %80 = vector.shape_cast %79 : vector<1x1x256xf32> to vector<1x256xf32>
    %c0_62 = arith.constant 0 : index
    %c12 = arith.constant 12 : index
    %c0_63 = arith.constant 0 : index
    %81 = vector.load %arg5[%c0_62, %c12, %c0_63] : memref<1x32x256xf32, #tpu.memory_space<vmem>>, vector<1x1x256xf32>
    %82 = vector.shape_cast %81 : vector<1x1x256xf32> to vector<1x256xf32>
    %83 = vector.shape_cast %80 : vector<1x256xf32> to vector<1x1x256xf32>
    tpu.vector_store %arg5[%c0_62, %c12, %c0_63], %83 {strides = array<i32>} : memref<1x32x256xf32, #tpu.memory_space<vmem>>, vector<1x1x256xf32>,
    %84 = arith.maximumf %78, %80 : vector<1x256xf32>
    %c0_64 = arith.constant 0 : index
    %c0_65 = arith.constant 0 : index
    %c129 = arith.constant 129 : index
    %85 = vector.load %arg1[%c0_64, %c0_65, %c129] : memref<1x1x512xf32, #tpu.memory_space<vmem>>, vector<1x1x256xf32>
    %86 = vector.shape_cast %85 : vector<1x1x256xf32> to vector<1x256xf32>
    %87 = arith.mulf %86, %2 : vector<1x256xf32>
    %c0_66 = arith.constant 0 : index
    %c13 = arith.constant 13 : index
    %c0_67 = arith.constant 0 : index
    %88 = vector.load %arg5[%c0_66, %c13, %c0_67] : memref<1x32x256xf32, #tpu.memory_space<vmem>>, vector<1x1x256xf32>
    %89 = vector.shape_cast %88 : vector<1x1x256xf32> to vector<1x256xf32>
    %90 = vector.shape_cast %87 : vector<1x256xf32> to vector<1x1x256xf32>
    tpu.vector_store %arg5[%c0_66, %c13, %c0_67], %90 {strides = array<i32>} : memref<1x32x256xf32, #tpu.memory_space<vmem>>, vector<1x1x256xf32>,
    %91 = arith.maximumf %84, %86 : vector<1x256xf32>
    %c0_68 = arith.constant 0 : index
    %c0_69 = arith.constant 0 : index
    %c130 = arith.constant 130 : index
    %92 = vector.load %arg1[%c0_68, %c0_69, %c130] : memref<1x1x512xf32, #tpu.memory_space<vmem>>, vector<1x1x256xf32>
    %93 = vector.shape_cast %92 : vector<1x1x256xf32> to vector<1x256xf32>
    %94 = arith.mulf %93, %3 : vector<1x256xf32>
    %c0_70 = arith.constant 0 : index
    %c14 = arith.constant 14 : index
    %c0_71 = arith.constant 0 : index
    %95 = vector.load %arg5[%c0_70, %c14, %c0_71] : memref<1x32x256xf32, #tpu.memory_space<vmem>>, vector<1x1x256xf32>
    %96 = vector.shape_cast %95 : vector<1x1x256xf32> to vector<1x256xf32>
    %97 = vector.shape_cast %94 : vector<1x256xf32> to vector<1x1x256xf32>
    tpu.vector_store %arg5[%c0_70, %c14, %c0_71], %97 {strides = array<i32>} : memref<1x32x256xf32, #tpu.memory_space<vmem>>, vector<1x1x256xf32>,
    %c0_72 = arith.constant 0 : index
    %c0_73 = arith.constant 0 : index
    %c142 = arith.constant 142 : index
    %98 = vector.load %arg1[%c0_72, %c0_73, %c142] : memref<1x1x512xf32, #tpu.memory_space<vmem>>, vector<1x1x256xf32>
    %99 = vector.shape_cast %98 : vector<1x1x256xf32> to vector<1x256xf32>
    %100 = arith.mulf %99, %0 : vector<1x256xf32>
    %c0_74 = arith.constant 0 : index
    %c15 = arith.constant 15 : index
    %c0_75 = arith.constant 0 : index
    %101 = vector.load %arg5[%c0_74, %c15, %c0_75] : memref<1x32x256xf32, #tpu.memory_space<vmem>>, vector<1x1x256xf32>
    %102 = vector.shape_cast %101 : vector<1x1x256xf32> to vector<1x256xf32>
    %103 = vector.shape_cast %100 : vector<1x256xf32> to vector<1x1x256xf32>
    tpu.vector_store %arg5[%c0_74, %c15, %c0_75], %103 {strides = array<i32>} : memref<1x32x256xf32, #tpu.memory_space<vmem>>, vector<1x1x256xf32>,
    %c0_76 = arith.constant 0 : index
    %c0_77 = arith.constant 0 : index
    %c143 = arith.constant 143 : index
    %104 = vector.load %arg1[%c0_76, %c0_77, %c143] : memref<1x1x512xf32, #tpu.memory_space<vmem>>, vector<1x1x256xf32>
    %105 = vector.shape_cast %104 : vector<1x1x256xf32> to vector<1x256xf32>
    %106 = arith.mulf %105, %1 : vector<1x256xf32>
    %c0_78 = arith.constant 0 : index
    %c16 = arith.constant 16 : index
    %c0_79 = arith.constant 0 : index
    %107 = vector.load %arg5[%c0_78, %c16, %c0_79] : memref<1x32x256xf32, #tpu.memory_space<vmem>>, vector<1x1x256xf32>
    %108 = vector.shape_cast %107 : vector<1x1x256xf32> to vector<1x256xf32>
    %109 = vector.shape_cast %106 : vector<1x256xf32> to vector<1x1x256xf32>
    tpu.vector_store %arg5[%c0_78, %c16, %c0_79], %109 {strides = array<i32>} : memref<1x32x256xf32, #tpu.memory_space<vmem>>, vector<1x1x256xf32>,
    %110 = arith.maximumf %91, %105 : vector<1x256xf32>
    %c0_80 = arith.constant 0 : index
    %c0_81 = arith.constant 0 : index
    %c144 = arith.constant 144 : index
    %111 = vector.load %arg1[%c0_80, %c0_81, %c144] : memref<1x1x512xf32, #tpu.memory_space<vmem>>, vector<1x1x256xf32>
    %112 = vector.shape_cast %111 : vector<1x1x256xf32> to vector<1x256xf32>
    %c0_82 = arith.constant 0 : index
    %c17 = arith.constant 17 : index
    %c0_83 = arith.constant 0 : index
    %113 = vector.load %arg5[%c0_82, %c17, %c0_83] : memref<1x32x256xf32, #tpu.memory_space<vmem>>, vector<1x1x256xf32>
    %114 = vector.shape_cast %113 : vector<1x1x256xf32> to vector<1x256xf32>
    %115 = vector.shape_cast %112 : vector<1x256xf32> to vector<1x1x256xf32>
    tpu.vector_store %arg5[%c0_82, %c17, %c0_83], %115 {strides = array<i32>} : memref<1x32x256xf32, #tpu.memory_space<vmem>>, vector<1x1x256xf32>,
    %116 = arith.maximumf %110, %112 : vector<1x256xf32>
    %c0_84 = arith.constant 0 : index
    %c0_85 = arith.constant 0 : index
    %c145 = arith.constant 145 : index
    %117 = vector.load %arg1[%c0_84, %c0_85, %c145] : memref<1x1x512xf32, #tpu.memory_space<vmem>>, vector<1x1x256xf32>
    %118 = vector.shape_cast %117 : vector<1x1x256xf32> to vector<1x256xf32>
    %119 = arith.mulf %118, %2 : vector<1x256xf32>
    %c0_86 = arith.constant 0 : index
    %c18 = arith.constant 18 : index
    %c0_87 = arith.constant 0 : index
    %120 = vector.load %arg5[%c0_86, %c18, %c0_87] : memref<1x32x256xf32, #tpu.memory_space<vmem>>, vector<1x1x256xf32>
    %121 = vector.shape_cast %120 : vector<1x1x256xf32> to vector<1x256xf32>
    %122 = vector.shape_cast %119 : vector<1x256xf32> to vector<1x1x256xf32>
    tpu.vector_store %arg5[%c0_86, %c18, %c0_87], %122 {strides = array<i32>} : memref<1x32x256xf32, #tpu.memory_space<vmem>>, vector<1x1x256xf32>,
    %123 = arith.maximumf %116, %118 : vector<1x256xf32>
    %c0_88 = arith.constant 0 : index
    %c0_89 = arith.constant 0 : index
    %c146 = arith.constant 146 : index
    %124 = vector.load %arg1[%c0_88, %c0_89, %c146] : memref<1x1x512xf32, #tpu.memory_space<vmem>>, vector<1x1x256xf32>
    %125 = vector.shape_cast %124 : vector<1x1x256xf32> to vector<1x256xf32>
    %126 = arith.mulf %125, %3 : vector<1x256xf32>
    %c0_90 = arith.constant 0 : index
    %c19 = arith.constant 19 : index
    %c0_91 = arith.constant 0 : index
    %127 = vector.load %arg5[%c0_90, %c19, %c0_91] : memref<1x32x256xf32, #tpu.memory_space<vmem>>, vector<1x1x256xf32>
    %128 = vector.shape_cast %127 : vector<1x1x256xf32> to vector<1x256xf32>
    %129 = vector.shape_cast %126 : vector<1x256xf32> to vector<1x1x256xf32>
    tpu.vector_store %arg5[%c0_90, %c19, %c0_91], %129 {strides = array<i32>} : memref<1x32x256xf32, #tpu.memory_space<vmem>>, vector<1x1x256xf32>,
    %c0_92 = arith.constant 0 : index
    %c0_93 = arith.constant 0 : index
    %c158 = arith.constant 158 : index
    %130 = vector.load %arg1[%c0_92, %c0_93, %c158] : memref<1x1x512xf32, #tpu.memory_space<vmem>>, vector<1x1x256xf32>
    %131 = vector.shape_cast %130 : vector<1x1x256xf32> to vector<1x256xf32>
    %132 = arith.mulf %131, %0 : vector<1x256xf32>
    %c0_94 = arith.constant 0 : index
    %c20 = arith.constant 20 : index
    %c0_95 = arith.constant 0 : index
    %133 = vector.load %arg5[%c0_94, %c20, %c0_95] : memref<1x32x256xf32, #tpu.memory_space<vmem>>, vector<1x1x256xf32>
    %134 = vector.shape_cast %133 : vector<1x1x256xf32> to vector<1x256xf32>
    %135 = vector.shape_cast %132 : vector<1x256xf32> to vector<1x1x256xf32>
    tpu.vector_store %arg5[%c0_94, %c20, %c0_95], %135 {strides = array<i32>} : memref<1x32x256xf32, #tpu.memory_space<vmem>>, vector<1x1x256xf32>,
    %c0_96 = arith.constant 0 : index
    %c0_97 = arith.constant 0 : index
    %c159 = arith.constant 159 : index
    %136 = vector.load %arg1[%c0_96, %c0_97, %c159] : memref<1x1x512xf32, #tpu.memory_space<vmem>>, vector<1x1x256xf32>
    %137 = vector.shape_cast %136 : vector<1x1x256xf32> to vector<1x256xf32>
    %138 = arith.mulf %137, %1 : vector<1x256xf32>
    %c0_98 = arith.constant 0 : index
    %c21 = arith.constant 21 : index
    %c0_99 = arith.constant 0 : index
    %139 = vector.load %arg5[%c0_98, %c21, %c0_99] : memref<1x32x256xf32, #tpu.memory_space<vmem>>, vector<1x1x256xf32>
    %140 = vector.shape_cast %139 : vector<1x1x256xf32> to vector<1x256xf32>
    %141 = vector.shape_cast %138 : vector<1x256xf32> to vector<1x1x256xf32>
    tpu.vector_store %arg5[%c0_98, %c21, %c0_99], %141 {strides = array<i32>} : memref<1x32x256xf32, #tpu.memory_space<vmem>>, vector<1x1x256xf32>,
    %c0_100 = arith.constant 0 : index
    %c0_101 = arith.constant 0 : index
    %c160 = arith.constant 160 : index
    %142 = vector.load %arg1[%c0_100, %c0_101, %c160] : memref<1x1x512xf32, #tpu.memory_space<vmem>>, vector<1x1x256xf32>
    %143 = vector.shape_cast %142 : vector<1x1x256xf32> to vector<1x256xf32>
    %c0_102 = arith.constant 0 : index
    %c22 = arith.constant 22 : index
    %c0_103 = arith.constant 0 : index
    %144 = vector.load %arg5[%c0_102, %c22, %c0_103] : memref<1x32x256xf32, #tpu.memory_space<vmem>>, vector<1x1x256xf32>
    %145 = vector.shape_cast %144 : vector<1x1x256xf32> to vector<1x256xf32>
    %146 = vector.shape_cast %143 : vector<1x256xf32> to vector<1x1x256xf32>
    tpu.vector_store %arg5[%c0_102, %c22, %c0_103], %146 {strides = array<i32>} : memref<1x32x256xf32, #tpu.memory_space<vmem>>, vector<1x1x256xf32>,
    %c0_104 = arith.constant 0 : index
    %c0_105 = arith.constant 0 : index
    %c161 = arith.constant 161 : index
    %147 = vector.load %arg1[%c0_104, %c0_105, %c161] : memref<1x1x512xf32, #tpu.memory_space<vmem>>, vector<1x1x256xf32>
    %148 = vector.shape_cast %147 : vector<1x1x256xf32> to vector<1x256xf32>
    %149 = arith.mulf %148, %2 : vector<1x256xf32>
    %c0_106 = arith.constant 0 : index
    %c23 = arith.constant 23 : index
    %c0_107 = arith.constant 0 : index
    %150 = vector.load %arg5[%c0_106, %c23, %c0_107] : memref<1x32x256xf32, #tpu.memory_space<vmem>>, vector<1x1x256xf32>
    %151 = vector.shape_cast %150 : vector<1x1x256xf32> to vector<1x256xf32>
    %152 = vector.shape_cast %149 : vector<1x256xf32> to vector<1x1x256xf32>
    tpu.vector_store %arg5[%c0_106, %c23, %c0_107], %152 {strides = array<i32>} : memref<1x32x256xf32, #tpu.memory_space<vmem>>, vector<1x1x256xf32>,
    %c0_108 = arith.constant 0 : index
    %c0_109 = arith.constant 0 : index
    %c162 = arith.constant 162 : index
    %153 = vector.load %arg1[%c0_108, %c0_109, %c162] : memref<1x1x512xf32, #tpu.memory_space<vmem>>, vector<1x1x256xf32>
    %154 = vector.shape_cast %153 : vector<1x1x256xf32> to vector<1x256xf32>
    %155 = arith.mulf %154, %3 : vector<1x256xf32>
    %c0_110 = arith.constant 0 : index
    %c24 = arith.constant 24 : index
    %c0_111 = arith.constant 0 : index
    %156 = vector.load %arg5[%c0_110, %c24, %c0_111] : memref<1x32x256xf32, #tpu.memory_space<vmem>>, vector<1x1x256xf32>
    %157 = vector.shape_cast %156 : vector<1x1x256xf32> to vector<1x256xf32>
    %158 = vector.shape_cast %155 : vector<1x256xf32> to vector<1x1x256xf32>
    tpu.vector_store %arg5[%c0_110, %c24, %c0_111], %158 {strides = array<i32>} : memref<1x32x256xf32, #tpu.memory_space<vmem>>, vector<1x1x256xf32>,
    %159 = arith.mulf %123, %4 : vector<1x256xf32>
    %c0_112 = arith.constant 0 : index
    %c25 = arith.constant 25 : index
    %c0_113 = arith.constant 0 : index
    %160 = vector.load %arg5[%c0_112, %c25, %c0_113] : memref<1x32x256xf32, #tpu.memory_space<vmem>>, vector<1x1x256xf32>
    %161 = vector.shape_cast %160 : vector<1x1x256xf32> to vector<1x256xf32>
    %162 = vector.shape_cast %159 : vector<1x256xf32> to vector<1x1x256xf32>
    tpu.vector_store %arg5[%c0_112, %c25, %c0_113], %162 {strides = array<i32>} : memref<1x32x256xf32, #tpu.memory_space<vmem>>, vector<1x1x256xf32>,
    %cst = arith.constant 1.000000e+00 : f32
    %163 = vector.broadcast %cst : f32 to vector<1x256xf32>
    %c0_114 = arith.constant 0 : index
    %c26 = arith.constant 26 : index
    %c0_115 = arith.constant 0 : index
    %164 = vector.load %arg5[%c0_114, %c26, %c0_115] : memref<1x32x256xf32, #tpu.memory_space<vmem>>, vector<1x1x256xf32>
    %165 = vector.shape_cast %164 : vector<1x1x256xf32> to vector<1x256xf32>
    %166 = vector.shape_cast %163 : vector<1x256xf32> to vector<1x1x256xf32>
    tpu.vector_store %arg5[%c0_114, %c26, %c0_115], %166 {strides = array<i32>} : memref<1x32x256xf32, #tpu.memory_space<vmem>>, vector<1x1x256xf32>,
    %cst_116 = arith.constant 0.000000e+00 : f32
    %167 = vector.broadcast %cst_116 : f32 to vector<5x256xf32>
    %c0_117 = arith.constant 0 : index
    %c27 = arith.constant 27 : index
    %c0_118 = arith.constant 0 : index
    %168 = vector.load %arg5[%c0_117, %c27, %c0_118] : memref<1x32x256xf32, #tpu.memory_space<vmem>>, vector<1x5x256xf32>
    %169 = vector.shape_cast %168 : vector<1x5x256xf32> to vector<5x256xf32>
    %170 = vector.shape_cast %167 : vector<5x256xf32> to vector<1x5x256xf32>
    tpu.vector_store %arg5[%c0_117, %c27, %c0_118], %170 {strides = array<i32>} : memref<1x32x256xf32, #tpu.memory_space<vmem>>, vector<1x5x256xf32>,
    %c0_119 = arith.constant 0 : index
    %c0_120 = arith.constant 0 : index
    %c0_121 = arith.constant 0 : index
    %171 = vector.load %arg5[%c0_119, %c0_120, %c0_121] : memref<1x32x256xf32, #tpu.memory_space<vmem>>, vector<1x32x256xf32>
    %172 = vector.shape_cast %171 : vector<1x32x256xf32> to vector<32x256xf32>
    %cst_122 = arith.constant dense<0.000000e+00> : vector<64x256xf32>
    %173 = tpu.matmul %5, %172, %cst_122 {dimension_numbers = #tpu.dot_dimension_numbers<[1], [0], [0], [1], [0, 0, 1, 1], [], []>} : vector<64x32xf32>, vector<32x256xf32>, vector<64x256xf32> -> vector<64x256xf32>
    %c0_123 = arith.constant 0 : index
    %c0_124 = arith.constant 0 : index
    %c0_125 = arith.constant 0 : index
    %174 = vector.load %arg4[%c0_123, %c0_124, %c0_125] : memref<1x64x256xf32, #tpu.memory_space<vmem>>, vector<1x64x256xf32>
    %175 = vector.shape_cast %174 : vector<1x64x256xf32> to vector<64x256xf32>
    %176 = vector.shape_cast %173 : vector<64x256xf32> to vector<1x64x256xf32>
    tpu.vector_store %arg4[%c0_123, %c0_124, %c0_125], %176 {strides = array<i32>} : memref<1x64x256xf32, #tpu.memory_space<vmem>>, vector<1x64x256xf32>,
    return
  }
  func.func @transform_0(%arg0: i32) -> (i32, i32, i32) {
    %c0_i32 = arith.constant 0 : i32
    %c0_i32_0 = arith.constant 0 : i32
    %c0_i32_1 = arith.constant 0 : i32
    return %arg0, %c0_i32, %c0_i32_0 : i32, i32, i32
  }
  func.func @transform_1(%arg0: i32) -> (i32, i32) {
    %c0_i32 = arith.constant 0 : i32
    %c0_i32_0 = arith.constant 0 : i32
    %c0_i32_1 = arith.constant 0 : i32
    return %c0_i32, %c0_i32_0 : i32, i32
  }
  func.func @transform_2(%arg0: i32) -> (i32, i32) {
    %c0_i32 = arith.constant 0 : i32
    %c0_i32_0 = arith.constant 0 : i32
    %c0_i32_1 = arith.constant 0 : i32
    return %c0_i32, %c0_i32_0 : i32, i32
  }
  func.func @transform_3(%arg0: i32) -> (i32, i32, i32) {
    %c0_i32 = arith.constant 0 : i32
    %c0_i32_0 = arith.constant 0 : i32
    %c0_i32_1 = arith.constant 0 : i32
    return %arg0, %c0_i32, %c0_i32_0 : i32, i32, i32
  }
}

</mosaic_0001>

<bundles_post_ra>
// kernel: tpu_custom_call.1
= control target key start
LH: loop header
LB: loop body
LE: loop exit
PB: predicated region body
PF: predicated region fallthrough
CT: control target
= control target key end

     0   :  { %8 = vsyncpa [#allocation4], 0  ;;  %s1535_s0 = inlined_call_operand.vmem [shape: f32[2,1,512], index: 0, kind: input, shape index: {}]   ;;  %s1536_s1 = inlined_call_operand.vmem [shape: f32[5,256], index: 1, kind: input, shape index: {}]   ;;  %s1537_s2 = inlined_call_operand.vmem [shape: f32[64,32], index: 2, kind: input, shape index: {}]   ;;  %s1538_s3 = inlined_call_operand.hbm [shape: f32[2,64,256], index: 3, kind: output, shape index: {}]  }
   0x1   :  { %10 = vsyncpa [#allocation4 + $0x1], 0  ;;  %s1104_s12 = smov 0   ;;  %s1106_s13 = smov 0  }
   0x2   :  { %s1108_s14 = smov 0   ;;  %s1110_s15 = smov 0  }
   0x3 LB: > { %s1125_s16 = sadd.s32 4294967295, %s1054_s15   ;;  %s890_s17 = sadd.s32 4294967294, %s1054_s15   ;;  %s1054_s15 = sphi %s1110_s15, %s1582_s15   ;;  %s1050_s14 = sphi %s1108_s14, %s1581_s14   ;;  %s1046_s13 = sphi %s1106_s13, %s1580_s13   ;;  %s1042_s12 = sphi %s1104_s12, %s1579_s12  }
   0x4   : > { %s1129_s18 = sadd.s32 1, %s1054_s15   ;;  %s91_s19 = sadd.s32 1, %s1050_s14 }
   0x5   : > { %s88_s20 = ssub.s32 %s1054_s15, %s1129_s18  ;;  %p101_p0 = scmp.ne.s32.totalorder %s1050_s14, %s1046_s13 }
   0x6   : > { %p89_p1 = scmp.eq.s32.totalorder %s88_s20, 0  ;;  %p102_p2 = scmp.eq.s32.totalorder %s1125_s16, 1 }
   0x7   : > { %p107_p3 = scmp.ne.s32.totalorder %s1046_s13, %s1042_s12  ;;  %p108_p4 = scmp.eq.s32.totalorder %s890_s17, 1 }
   0x8   : > { %s1140_s21 = scalar_select %p89_p1, %s1050_s14, %s91_s19  }
   0x9   : > { %p1142_p5 = por %p102_p2, %p101_p0  ;;  %p1146_p6 = por %p108_p4, %p107_p3 }
   0xa   : > { %p893_p7 = scmp.ge.s32.totalorder %s1054_s15, 1  ;;  %p139_p8 = scmp.lt.s32.totalorder %s1054_s15, 3 }
   0xc   : > { %p140_p9 = pnand %p893_p7, %p139_p8 }
   0xd   : > { %p162_p10 = scmp.lt.s32.totalorder (!%p140_p9), %s1125_s16, 1  ;;  %v199_v0 = vlaneseq (!%p140_p9)  ;;  %s1056_s29 = smov (!%p140_p9), 112   ;;  %v896_v8 = vld [vmem:[%s1536_s1 + $0x1] ss:$8 sm:$0x3] (!%p140_p9)  ;;  %vm1555_vm1 = vcmask (!%p140_p9), 777216  }
   0xe   : > { %143 = sbr.rel (%p140_p9) target bundleno = 575 (0x23f), region = 32  ;;  %s1546_s30 = smov (!%p140_p9), 127   ;;  %v166_v9 = vld [vmem:[%s1536_s1] ss:$8 sm:$0x3] (!%p140_p9)  ;;  %vm1556_vm2 = vcmask (!%p140_p9), 769024  }
   0xf   : > { %vm1159_vm0 = vcmp.lt.s32.totalorder (!%p140_p9), %v199_v0, 256  ;;  %s1058_s4 = smov (!%p140_p9), 111   ;;  %s1547_s5 = smov (!%p140_p9), 126   ;;  %v898_v10 = vld [vmem:[%s1536_s1 + $0x3] ss:$8 sm:$0x3] (!%p140_p9) }
  0x10   : > { %s1060_s6 = smov (!%p140_p9), 96   ;;  %s1542_s7 = smov (!%p140_p9), 110   ;;  %v897_v11 = vld [vmem:[%s1536_s1 + $0x2] ss:$8 sm:$0x3] (!%p140_p9)  ;;  %vm1549_vm3 = vcmask (!%p140_p9), 801792  }
  0x11   : > { %s1541_s17 = smov (!%p140_p9), 95   ;;  %s1544_s19 = smov (!%p140_p9), 94   ;;  %v899_v14 = vld [vmem:[%s1536_s1 + $0x4] ss:$8 sm:$0x3] (!%p140_p9)  ;;  %vm1548_vm4 = vcmask (!%p140_p9), 793600  }
  0x12   : > { %s1540_s27 = smov (!%p140_p9), 98   ;;  %s1539_s8 = smov (!%p140_p9), 97   ;;  %vm295_vm5 = vcmask (!%p140_p9), 908288   ;;  %vm1553_vm6 = vcmask (!%p140_p9), 900096   ;;  %vm1551_vm7 = vcmask (!%p140_p9), 932864   ;;  %vm1550_vm8 = vcmask (!%p140_p9), 924672  }
  0x13   : > { %s1545_s9 = smov (!%p140_p9), 114   ;;  %s1543_s10 = smov (!%p140_p9), 113   ;;  %vm1552_vm9 = vcmask (!%p140_p9), 1039360   ;;  %vm1554_vm10 = vcmask (!%p140_p9), 1031168   ;;  %vm382_vm11 = vcmask (!%p140_p9), 15360   ;;  %vm399_vm12 = vcmask (!%p140_p9), 7168  }
  0x14   : > { %s1068_s11 = smov (!%p140_p9), 2   ;;  %s1069_s20 = smov (!%p140_p9), 1   ;;  %vm365_vm13 = vcmask (!%p140_p9), 113664   ;;  %vm409_vm14 = vcmask (!%p140_p9), 916480   ;;  %vm339_vm15 = vcmask (!%p140_p9), 121856   ;;  %v176_v1 = vld [vmem:[%s1537_s2 + $0x8] sm:$0xff] (!%p140_p9) }
  0x15   : > { %s163_s24 = scalar_select %p162_p10, %s1125_s16, 1 }
  0x16   : > { %s1072_s26 = smov 18  }
  0x17   : > { %s895_s25 = sshll.u32 %s163_s24, 2  ;;  %s1070_s24 = smov 14  }
  0x18   : > { %s1157_s28 = scalar_lea.vmem %s1535_s0, %s895_s25  ;;  %s1071_s25 = smov 15  }
  0x19   : > { %v1164_v2 = vld [vmem:[%s1157_s28] sm:$0x7] }
  0x1a   : > { %v1167_v3 = vld [vmem:[%s1157_s28] sm:$0x7]  ;;  %406 = vrot.lane.b32.xlu1 %v1164_v2, %s1056_s29 }
  0x1b   : > { %v413_v4 = vld [vmem:[%s1157_s28 + $0x1] sm:$0x3]  ;;  %320 = vrot.lane.b32.xlu0 %v1167_v3, %s1546_s30 }
  0x1c   : > { %415 = vst.msk [vmem:[#allocation2 + $0x14] ss:$8 sm:$0x3] %vm1159_vm0, %v413_v4  ;;  %v1177_v5 = vld [vmem:[%s1157_s28] sm:$0x7] }
  0x1d   : > { %v1183_v6 = vld [vmem:[%s1157_s28 + $0x1] sm:$0x7] }
  0x1e   : > { %418 = vrot.lane.b32.xlu1 %v413_v4, %s1058_s4  ;;  %v1186_v7 = vld [vmem:[%s1157_s28 + $0x1] sm:$0x7] }
  0x1f   : > { %346 = vrot.lane.b32.xlu0 %v1177_v5, %s1547_s5  ;;  %v503_v12 = vld [vmem:[%s1157_s28 + $0x1] sm:$0x7] }
  0x20   : > { %v1220_v13 = vld [vmem:[%s1157_s28 + $0x1] sm:$0x7] }
  0x21   : > { %v224_v15 = vld [vmem:[%s1157_s28] sm:$0x7] }
  0x22   : > { %496 = vrot.lane.b32.xlu1 %v1183_v6, %s1060_s6  ;;  %v590_v16 = vld [vmem:[%s1157_s28 + $0x1] sm:$0x7] }
  0x23   : > { %441 = vrot.lane.b32.xlu0 %v1186_v7, %s1542_s7  ;;  %v205_v25 = vld [vmem:[%s1157_s28] sm:$0x7] }
  0x24   : > { %v183_v27 = vld [vmem:[%s1157_s28] sm:$0x7] }
  0x25   : > { %v254_v35 = vld [vmem:[%s1157_s28] sm:$0x7] }
  0x26   : > { %207 = vrot.lane.b32.xlu1 %v896_v8, %s1541_s17  ;;  %v235_v37 = vld [vmem:[%s1157_s28] sm:$0x7] }
  0x27   : > { %185 = vrot.lane.b32.xlu0 %v166_v9, %s1544_s19  ;;  %v273_v46 = vld [vmem:[%s1157_s28] sm:$0x7] }
  0x28   : > { %v291_v48 = vld [vmem:[%s1157_s28] sm:$0x7] }
  0x29   : > { %v353_v55 = vld [vmem:[%s1157_s28] sm:$0x7] }
  0x2a   : > { %256 = vrot.lane.b32.xlu1 %v898_v10, %s1540_s27  ;;  %s1074_s27 = smov 31   ;;  %v371_v4 = vld [vmem:[%s1157_s28] sm:$0x7] }
  0x2b   : > { %237 = vrot.lane.b32.xlu0 %v897_v11, %s1539_s8  ;;  %s1073_s8 = smov 17  }
  0x2e   : > { %292 = vrot.lane.b32.xlu1 %v896_v8, %s1058_s4 }
  0x2f   : > { %274 = vrot.lane.b32.xlu0 %v166_v9, %s1542_s7  ;;  %s1076_s7 = smov 34  }
  0x32   : > { %354 = vrot.lane.b32.xlu1 %v898_v10, %s1545_s9 }
  0x33   : > { %328 = vrot.lane.b32.xlu0 %v897_v11, %s1543_s10  ;;  %s1077_s10 = smov 33  }
  0x36   : > { %389 = vrot.lane.b32.xlu1 %v896_v8, %s1546_s30  ;;  %s1078_s30 = smov 32  }
  0x37   : > { %372 = vrot.lane.b32.xlu0 %v166_v9, %s1547_s5  ;;  %s1079_s5 = smov 16  }
  0x3a   : > { %448 = vrot.lane.b32.xlu1 %v898_v10, %s1068_s11 }
  0x3b   : > { %425 = vrot.lane.b32.xlu0 %v897_v11, %s1069_s20 }
  0x3e   : > { %513 = vrot.lane.b32.xlu1 %v503_v12, %s1541_s17  ;;  %s1075_s17 = smov 30  }
  0x3f   : > { %464 = vrot.lane.b32.xlu0 %v166_v9, %s1070_s24 }
  0x42   : > { %480 = vrot.lane.b32.xlu1 %v896_v8, %s1071_s25 }
  0x43   : > { %536 = vrot.lane.b32.xlu0 %v1220_v13, %s1544_s19  ;;  %s1567_s19 = smov 97  }
  0x46   : > { %543 = vrot.lane.b32.xlu1 %v898_v10, %s1072_s26 }
  0x47   : > { %520 = vrot.lane.b32.xlu0 %v897_v11, %s1073_s8 }
  0x4a   : > { %575 = vrot.lane.b32.xlu1 %v896_v8, %s1074_s27 }
  0x4b   : > { %559 = vrot.lane.b32.xlu0 %v166_v9, %s1075_s17 }
  0x4e   : > { %617 = vrot.lane.b32.xlu1 %v898_v10, %s1076_s7 }
  0x4f   : > { %601 = vrot.lane.b32.xlu0 %v897_v11, %s1077_s10 }
  0x52   : > { %226 = vrot.lane.b32.xlu1 %v224_v15, %s1078_s30  ;;  %s1562_s30 = smov 127  }
  0x53   : > { %633 = vrot.lane.b32.xlu0 %v899_v14, %s1058_s4 }
  0x56   : > { %505 = vrot.lane.b32.xlu1 %v503_v12, %s1056_s29  ;;  %s1561_s29 = smov 126  }
  0x57   : > { %311 = vrot.lane.b32.xlu0 %v1167_v3, %s1079_s5 }
  0x5b   : > { %592 = vrot.lane.b32.xlu0 %v590_v16, %s1060_s6  ;;  %s1563_s6 = smov 114  }
  0x8c   : > { %v1241_v17 = vpop.permute.xlu1 %406 }
  0x8d   : > { %v1243_v18 = vpop.permute.xlu0 %320 }
  0x8e   : > { %v322_v0 = vrot.slane %v1243_v18, 1 }
  0x90   : > { %v1245_v19 = vpop.permute.xlu1 %418  ;;  %v324_v16 = vsel %vm1552_vm9, %v1243_v18, %v322_v0 }
  0x91   : > { %v1247_v20 = vpop.permute.xlu0 %346 }
  0x92   : > { %v348_v9 = vrot.slane %v1247_v20, 1 }
  0x94   : > { %v1249_v21 = vpop.permute.xlu1 %496 }
  0x95   : > { %v1251_v22 = vpop.permute.xlu0 %441 }
  0x98   : > { %v208_v23 = vpop.permute.xlu1 %207 }
  0x99   : > { %v186_v24 = vpop.permute.xlu0 %185  ;;  %v209_v26 = vrot.slane %v208_v23, 7 }
  0x9a   : > { %v187_v28 = vrot.slane %v186_v24, 7 }
  0x9b   : > { %v211_v29 = vsel %vm1555_vm1, %v209_v26, %v208_v23  ;;  %v447_v23 = vld [vmem:[%s1157_s28 + $0x1] sm:$0x7]  ;;  %v350_v26 = vsel %vm1554_vm10, %v1247_v20, %v348_v9  ;;  %v1080_v9 = vmov 1.0  }
  0x9c   : > { %v189_v30 = vsel %vm1556_vm2, %v187_v28, %v186_v24  ;;  %v213_v31 = vmul.f32 %v211_v29, %v205_v25  ;;  %v257_v33 = vpop.permute.xlu1 %256  ;;  %v326_v28 = vmax.f32 %v291_v48, %v324_v16  ;;  %649 = vst.msk [vmem:[#allocation2 + $0x32] ss:$8 sm:$0x3] %vm1159_vm0, %v1080_v9 }
  0x9d   : > { %v191_v32 = vmul.f32 %v189_v30, %v183_v27  ;;  %v238_v34 = vpop.permute.xlu0 %237  ;;  %v258_v36 = vrot.slane %v257_v33, 7 }
  0x9e   : > { %v239_v38 = vrot.slane %v238_v34, 7  ;;  %215 = vrot.lane.b32.xlu0 %v213_v31, %s1077_s10  ;;  %s913_s10 = sshll.u32 %s1125_s16, 11 }
  0x9f   : > { %193 = vrot.lane.b32.xlu1 %v191_v32, %s1076_s7  ;;  %v260_v39 = vsel %vm1549_vm3, %v258_v36, %v257_v33  ;;  %v408_v32 = vrot.slane %v1241_v17, 1  ;;  %v463_v33 = vld [vmem:[%s1157_s28 + $0x1] sm:$0x7]  ;;  %vm303_vm3 = vcmask 138240   ;;  %s1564_s7 = smov 113  }
  0xa0   : > { %v241_v40 = vsel %vm1548_vm4, %v239_v38, %v238_v34  ;;  %v262_v41 = vmul.f32 %v260_v39, %v254_v35  ;;  %v293_v43 = vpop.permute.xlu1 %292  ;;  %v352_v35 = vmax.f32 %v326_v28, %v350_v26  ;;  %v420_v39 = vrot.slane %v1245_v19, 7 }
  0xa1   : > { %v243_v42 = vmul.f32 %v241_v40, %v235_v37  ;;  %v275_v44 = vpop.permute.xlu0 %274  ;;  %v294_v45 = vrot.slane %v293_v43, 7  ;;  %v410_v38 = vsel %vm409_vm14, %v1241_v17, %v408_v32  ;;  %vm285_vm4 = vcmask 146432  }
  0xa2   : > { %v276_v47 = vrot.slane %v275_v44, 7  ;;  %v443_v17 = vrot.slane %v1251_v22, 7 }
  0xa3   : > { %245 = vrot.lane.b32.xlu0 %v243_v42, %s1074_s27  ;;  %264 = vrot.lane.b32.xlu1 %v262_v41, %s1075_s17  ;;  %v296_v49 = vsel %vm295_vm5, %v294_v45, %v293_v43  ;;  %v412_v41 = vmax.f32 %v352_v35, %v410_v38  ;;  %s1565_s17 = smov 110   ;;  %s1569_s27 = smov 95  }
  0xa4   : > { %v278_v50 = vsel %vm1553_vm6, %v276_v47, %v275_v44  ;;  %v298_v51 = vmul.f32 %v296_v49, %v291_v48  ;;  %v355_v53 = vpop.permute.xlu1 %354  ;;  %v542_v47 = vld [vmem:[%s1157_s28 + $0x1] sm:$0x7] }
  0xa5   : > { %v280_v52 = vmul.f32 %v278_v50, %v273_v46  ;;  %v329_v54 = vpop.permute.xlu0 %328  ;;  %v356_v56 = vrot.slane %v355_v53, 7  ;;  %v421_v46 = vsel %vm295_vm5, %v420_v39, %v1245_v19  ;;  %v574_v19 = vld [vmem:[%s1157_s28 + $0x1] sm:$0x7] }
  0xa6   : > { %v330_v57 = vrot.slane %v329_v54, 7  ;;  %v423_v50 = vmax.f32 %v412_v41, %v421_v46 }
  0xa7   : > { %282 = vrot.lane.b32.xlu0 %v280_v52, %s1072_s26  ;;  %300 = vrot.lane.b32.xlu1 %v298_v51, %s1073_s8  ;;  %v358_v58 = vsel %vm1551_vm7, %v356_v56, %v355_v53  ;;  %v498_v52 = vrot.slane %v1249_v21, 7  ;;  %vm267_vm7 = vcmask 244736  }
  0xa8   : > { %v332_v59 = vsel %vm1550_vm8, %v330_v57, %v329_v54  ;;  %v360_v60 = vmul.f32 %v358_v58, %v353_v55  ;;  %v390_v62 = vpop.permute.xlu1 %389  ;;  %vm248_vm8 = vcmask 252928   ;;  %v444_v57 = vsel %vm1553_vm6, %v443_v17, %v1251_v22 }
  0xa9   : > { %v334_v61 = vmul.f32 %v332_v59, %v1177_v5  ;;  %v373_v63 = vpop.permute.xlu0 %372  ;;  %v391_v3 = vrot.slane %v390_v62, 7  ;;  %vm196_vm6 = vcmask 277504  }
  0xaa   : > { %v374_v8 = vrot.slane %v373_v63, 7 }
  0xab   : > { %362 = vrot.lane.b32.xlu0 %v360_v60, %s1070_s24  ;;  %336 = vrot.lane.b32.xlu1 %v334_v61, %s1071_s25  ;;  %v392_v10 = vsel %vm1552_vm9, %v391_v3, %v390_v62  ;;  %v558_v60 = vld [vmem:[%s1157_s28 + $0x1] sm:$0x7]  ;;  %vm499_vm9 = vcmask 785408   ;;  %v446_v62 = vmax.f32 %v423_v50, %v444_v57  ;;  %s1483_s25 = scalar_lea.hbm %s1538_s3, %s913_s10 }
  0xac   : > { %v375_v5 = vsel %vm1554_vm10, %v374_v8, %v373_v63  ;;  %v394_v11 = vmul.f32 %v392_v10, %v1164_v2  ;;  %v449_v14 = vpop.permute.xlu1 %448  ;;  %vm218_vm10 = vcmask 269312   ;;  %v1081_v10 = vmov 0.0  }
  0xad   : > { %v377_v12 = vmul.f32 %v375_v5, %v371_v4  ;;  %v426_v15 = vpop.permute.xlu0 %425  ;;  %v450_v24 = vrot.slane %v449_v14, 7  ;;  %652 = vst [vmem:[#allocation2 + $0x38] sm:$0xf8] %v1081_v10  ;;  %651 = vst [vmem:[#allocation2 + $0x30] sm:$0xf8] %v1081_v10  ;;  %749 = vmatprep.mubr.f32.mxu0 %v1081_v10  ;;  %773 = vmatprep.mubr.f32.mxu1 %v1081_v10  ;;  %v500_v5 = vsel %vm499_vm9, %v498_v52, %v1249_v21 }
  0xae   : > { %v427_v25 = vrot.slane %v426_v15, 7 }
  0xaf   : > { %396 = vrot.lane.b32.xlu0 %v394_v11, %s1069_s20  ;;  %379 = vrot.lane.b32.xlu1 %v377_v12, %s1068_s11  ;;  %v451_v2 = vsel %vm382_vm11, %v450_v24, %v449_v14  ;;  %v616_v12 = vld [vmem:[%s1157_s28 + $0x1] sm:$0x7] }
  0xb0   : > { %v428_v27 = vsel %vm399_vm12, %v427_v25, %v426_v15  ;;  %v453_v29 = vmul.f32 %v451_v2, %v447_v23  ;;  %v1293_v18 = vpop.permute.xlu1 %513  ;;  %v600_v15 = vld [vmem:[%s1157_s28 + $0x1] sm:$0x7]  ;;  %v502_v23 = vmax.f32 %v446_v62, %v500_v5  ;;  %s1568_s28 = smov 94  }
  0xb1   : > { %v430_v30 = vmul.f32 %v428_v27, %v1186_v7  ;;  %v465_v31 = vpop.permute.xlu0 %464  ;;  %v515_v58 = vrot.slane %v1293_v18, 7 }
  0xb2   : > { %v466_v34 = vrot.slane %v465_v31, 7 }
  0xb3   : > { %455 = vrot.lane.b32.xlu0 %v453_v29, %s1561_s29  ;;  %432 = vrot.lane.b32.xlu1 %v430_v30, %s1562_s30  ;;  %v516_v11 = vsel %vm1555_vm1, %v515_v58, %v1293_v18  ;;  %vm229_vm1 = vcmask 261120   ;;  %s1082_s29 = smov [#allocation3]  }
  0xb4   : > { %v467_v20 = vsel %vm365_vm13, %v466_v34, %v465_v31  ;;  %v481_v7 = vpop.permute.xlu1 %480  ;;  %v518_v21 = vmax.f32 %v502_v23, %v516_v11  ;;  %s996_s30 = sshll.u32 %s1082_s29, 4  ;;  %s997_s30 = int_to_ptr.vmem [resolvable:$false] %s996_s30 }
  0xb5   : > { %v469_v36 = vmul.f32 %v467_v20, %v463_v33  ;;  %v1300_v37 = vpop.permute.xlu0 %536  ;;  %v482_v40 = vrot.slane %v481_v7, 7 }
  0xb6   : > { %v538_v63 = vrot.slane %v1300_v37, 7 }
  0xb7   : > { %471 = vrot.lane.b32.xlu1 %v469_v36, %s1563_s6  ;;  %v483_v42 = vsel %vm339_vm15, %v482_v40, %v481_v7  ;;  %s998_s6 = scalar_lea.vmem %s997_s30, 4096 }
  0xb8   : > { %v485_v43 = vmul.f32 %v483_v42, %v1183_v6  ;;  %v544_v44 = vpop.permute.xlu1 %543  ;;  %v539_v24 = vsel %vm1556_vm2, %v538_v63, %v1300_v37  ;;  %vm314_vm2 = vcmask 130048  }
  0xb9   : > { %v521_v45 = vpop.permute.xlu0 %520  ;;  %v545_v48 = vrot.slane %v544_v44, 7  ;;  %v541_v31 = vmax.f32 %v518_v21, %v539_v24 }
  0xba   : > { %v522_v49 = vrot.slane %v521_v45, 7  ;;  %487 = vrot.lane.b32.xlu0 %v485_v43, %s1564_s7 }
  0xbb   : > { %v546_v51 = vsel %vm285_vm4, %v545_v48, %v544_v44 }
  0xbc   : > { %v523_v6 = vsel %vm303_vm3, %v522_v49, %v521_v45  ;;  %v548_v53 = vmul.f32 %v546_v51, %v542_v47  ;;  %v576_v55 = vpop.permute.xlu1 %575 }
  0xbd   : > { %v525_v54 = vmul.f32 %v523_v6, %v1220_v13  ;;  %v560_v56 = vpop.permute.xlu0 %559  ;;  %v577_v59 = vrot.slane %v576_v55, 7 }
  0xbe   : > { %v561_v61 = vrot.slane %v560_v56, 7  ;;  %550 = vrot.lane.b32.xlu1 %v548_v53, %s1565_s17 }
  0xbf   : > { %527 = vrot.lane.b32.xlu0 %v525_v54, %s1058_s4  ;;  %v578_v13 = vsel %vm248_vm8, %v577_v59, %v576_v55  ;;  %s1566_s4 = smov 98  }
  0xc0   : > { %v562_v0 = vsel %vm267_vm7, %v561_v61, %v560_v56  ;;  %v580_v3 = vmul.f32 %v578_v13, %v574_v19  ;;  %v618_v4 = vpop.permute.xlu1 %617 }
  0xc1   : > { %v564_v22 = vmul.f32 %v562_v0, %v558_v60  ;;  %v602_v8 = vpop.permute.xlu0 %601  ;;  %v619_v14 = vrot.slane %v618_v4, 7 }
  0xc2   : > { %v603_v16 = vrot.slane %v602_v8, 7  ;;  %582 = vrot.lane.b32.xlu1 %v580_v3, %s1567_s19 }
  0xc3   : > { %566 = vrot.lane.b32.xlu0 %v564_v22, %s1566_s4  ;;  %v620_v25 = vsel %vm196_vm6, %v619_v14, %v618_v4 }
  0xc4   : > { %v604_v26 = vsel %vm218_vm10, %v603_v16, %v602_v8  ;;  %v622_v2 = vmul.f32 %v620_v25, %v616_v12  ;;  %v227_v29 = vpop.permute.xlu1 %226 }
  0xc5   : > { %v606_v27 = vmul.f32 %v604_v26, %v600_v15  ;;  %v634_v28 = vpop.permute.xlu0 %633  ;;  %v228_v18 = vrot.slane %v227_v29, 1 }
  0xc6   : > { %v635_v30 = vrot.slane %v634_v28, 7 }
  0xc7   : > { %624 = vrot.lane.b32.xlu0 %v622_v2, %s1568_s28  ;;  %608 = vrot.lane.b32.xlu1 %v606_v27, %s1569_s27  ;;  %v230_v33 = vsel %vm229_vm1, %v227_v29, %v228_v18  ;;  %s159_s27 = sand.u32 1, %s1046_s13  }
  0xc8   : > { %v636_v32 = vsel %vm295_vm5, %v635_v30, %v634_v28  ;;  %233 = vst.msk [vmem:[#allocation2 + $0x2] ss:$8 sm:$0x3] %vm1159_vm0, %v230_v33  ;;  %v506_v20 = vpop.permute.xlu1 %505  ;;  %s1493_s16 = scalar_lea.sflag [#allocation4], %s159_s27 }
  0xc9   : > { %v638_v34 = vmul.f32 %v636_v32, %v541_v31  ;;  %v312_v35 = vpop.permute.xlu0 %311  ;;  %v507_v7 = vrot.slane %v506_v20, 1 }
  0xca   : > { %v313_v36 = vrot.slane %v312_v35, 1 }
  0xcb   : > { %640 = vrot.lane.b32.xlu1 %v638_v34, %s1073_s8  ;;  %v508_v38 = vsel %vm409_vm14, %v506_v20, %v507_v7  ;;  %s894_s8 = sshll.u32 %s159_s27, 7 }
  0xcc   : > { %v315_v37 = vsel %vm314_vm2, %v312_v35, %v313_v36  ;;  %511 = vst.msk [vmem:[#allocation2 + $0x21] ss:$8 sm:$0x3] %vm1159_vm0, %v508_v38  ;;  %vm1570_vm2 = vcmask 1031168   ;;  %s1464_s9 = scalar_lea.vmem [#allocation3], %s894_s8 }
  0xcd   : > { %318 = vst.msk [vmem:[#allocation2 + $0x7] ss:$8 sm:$0x3] %vm1159_vm0, %v315_v37  ;;  %v593_v39 = vpop.permute.xlu0 %592  ;;  %s828_s11 = sshll.u32 %s1464_s9, 4  ;;  %s1485_s11 = int_to_ptr.vmem [resolvable:$true] %s828_s11 }
  0xce   : > { %v594_v40 = vrot.slane %v593_v39, 1  ;;  %s992_s26 = scalar_lea.vmem %s1485_s11, 2048  ;;  %p999_p0 = scmp.lt.s32.totalorder %s1485_s11, %s997_s30 }
  0xcf   : > { %p993_p11 = scmp.ne.s32.totalorder %s1485_s11, %s992_s26  ;;  %p1000_p1 = scmp.lt.s32.totalorder %s998_s6, %s992_s26 }
  0xd0   : > { %v595_v41 = vsel %vm499_vm9, %v593_v39, %v594_v40  ;;  %vm1576_vm9 = vcmask 793600  }
  0xd1   : > { %598 = vst.msk [vmem:[#allocation2 + $0x26] ss:$8 sm:$0x3] %vm1159_vm0, %v595_v41  ;;  %p994_p12 = pnand %p993_p11, %p1142_p5  ;;  %p1001_p2 = por %p1000_p1, %p999_p0 }
  0xd3   : > { %p995_p13 = pneg %p994_p12 }
  0xd5   : > { %p1002_p3 = pnand %p1001_p2, %p995_p13 }
 0x110   : > { %v216_v42 = vpop.permute.xlu0 %215 }
 0x111   : > { %v194_v43 = vpop.permute.xlu1 %193  ;;  %v217_v44 = vrot.slane %v216_v42, 1 }
 0x112   : > { %v195_v45 = vrot.slane %v194_v43, 1 }
 0x113   : > { %v219_v46 = vsel %vm218_vm10, %v216_v42, %v217_v44  ;;  %vm1577_vm10 = vcmask 769024  }
 0x114   : > { %v197_v17 = vsel %vm196_vm6, %v194_v43, %v195_v45  ;;  %222 = vst.msk [vmem:[#allocation2 + $0x1] ss:$8 sm:$0x3] %vm1159_vm0, %v219_v46  ;;  %vm1572_vm6 = vcmask 932864  }
 0x115   : > { %203 = vst.msk [vmem:[#allocation2] ss:$8 sm:$0x3] %vm1159_vm0, %v197_v17  ;;  %v246_v47 = vpop.permute.xlu0 %245  ;;  %v265_v48 = vpop.permute.xlu1 %264 }
 0x116   : > { %v247_v49 = vrot.slane %v246_v47, 1  ;;  %v266_v50 = vrot.slane %v265_v48, 1 }
 0x118   : > { %v249_v51 = vsel %vm248_vm8, %v246_v47, %v247_v49  ;;  %v268_v6 = vsel %vm267_vm7, %v265_v48, %v266_v50  ;;  %vm1573_vm7 = vcmask 924672   ;;  %vm1574_vm8 = vcmask 900096  }
 0x119   : > { %252 = vst.msk [vmem:[#allocation2 + $0x3] ss:$8 sm:$0x3] %vm1159_vm0, %v249_v51  ;;  %271 = vst.msk [vmem:[#allocation2 + $0x4] ss:$8 sm:$0x3] %vm1159_vm0, %v268_v6  ;;  %v283_v52 = vpop.permute.xlu0 %282  ;;  %v301_v53 = vpop.permute.xlu1 %300 }
 0x11a   : > { %v284_v54 = vrot.slane %v283_v52, 1  ;;  %v302_v19 = vrot.slane %v301_v53, 1 }
 0x11c   : > { %v286_v55 = vsel %vm285_vm4, %v283_v52, %v284_v54  ;;  %v304_v56 = vsel %vm303_vm3, %v301_v53, %v302_v19  ;;  %vm1571_vm4 = vcmask 1039360   ;;  %v175_v53 = vld [vmem:[%s1537_s2] sm:$0xff]  ;;  %v180_v19 = vld [vmem:[%s1537_s2 + $0x28] sm:$0xff] }
 0x11d   : > { %289 = vst.msk [vmem:[#allocation2 + $0x5] ss:$8 sm:$0x3] %vm1159_vm0, %v286_v55  ;;  %307 = vst.msk [vmem:[#allocation2 + $0x6] ss:$8 sm:$0x3] %vm1159_vm0, %v304_v56  ;;  %v363_v57 = vpop.permute.xlu0 %362  ;;  %v337_v58 = vpop.permute.xlu1 %336 }
 0x11e   : > { %v364_v59 = vrot.slane %v363_v57, 1  ;;  %v338_v60 = vrot.slane %v337_v58, 1  ;;  %v179_v54 = vld [vmem:[%s1537_s2 + $0x20] sm:$0xff]  ;;  %v177_v55 = vld [vmem:[%s1537_s2 + $0x10] sm:$0xff] }
 0x11f   : > { %v181_v56 = vld [vmem:[%s1537_s2 + $0x30] sm:$0xff] }
 0x120   : > { %v366_v61 = vsel %vm365_vm13, %v363_v57, %v364_v59  ;;  %v340_v62 = vsel %vm339_vm15, %v337_v58, %v338_v60  ;;  %v178_v57 = vld [vmem:[%s1537_s2 + $0x18] sm:$0xff] }
 0x121   : > { %369 = vst.msk [vmem:[#allocation2 + $0x11] ss:$8 sm:$0x3] %vm1159_vm0, %v366_v61  ;;  %343 = vst.msk [vmem:[#allocation2 + $0x10] ss:$8 sm:$0x3] %vm1159_vm0, %v340_v62  ;;  %v397_v63 = vpop.permute.xlu0 %396  ;;  %v380_v13 = vpop.permute.xlu1 %379 }
 0x122   : > { %v398_v0 = vrot.slane %v397_v63, 1  ;;  %v381_v3 = vrot.slane %v380_v13, 1  ;;  %v182_v58 = vld [vmem:[%s1537_s2 + $0x38] sm:$0xff] }
 0x124   : > { %v400_v22 = vsel %vm399_vm12, %v397_v63, %v398_v0  ;;  %v383_v4 = vsel %vm382_vm11, %v380_v13, %v381_v3  ;;  %v654_v29 = vld [vmem:[#allocation2 + $0x8] sm:$0xff]  ;;  %v653_v32 = vld [vmem:[#allocation2] sm:$0xff]  ;;  %vm1578_vm11 = vcmask 777216  }
 0x125   : > { %403 = vst.msk [vmem:[#allocation2 + $0x13] ss:$8 sm:$0x3] %vm1159_vm0, %v400_v22  ;;  %386 = vst.msk [vmem:[#allocation2 + $0x12] ss:$8 sm:$0x3] %vm1159_vm0, %v383_v4  ;;  %v456_v8 = vpop.permute.xlu0 %455  ;;  %v433_v9 = vpop.permute.xlu1 %432 }
 0x126   : > { %v457_v5 = vrot.slane %v456_v8, 1  ;;  %v434_v11 = vrot.slane %v433_v9, 1 }
 0x128   : > { %v458_v12 = vsel %vm1570_vm2, %v456_v8, %v457_v5  ;;  %v435_v14 = vsel %vm1571_vm4, %v433_v9, %v434_v11 }
 0x129   : > { %461 = vst.msk [vmem:[#allocation2 + $0x16] ss:$8 sm:$0x3] %vm1159_vm0, %v458_v12  ;;  %438 = vst.msk [vmem:[#allocation2 + $0x15] ss:$8 sm:$0x3] %vm1159_vm0, %v435_v14  ;;  %v472_v15 = vpop.permute.xlu1 %471 }
 0x12a   : > { %v473_v16 = vrot.slane %v472_v15, 1 }
 0x12c   : > { %v474_v23 = vsel %vm1572_vm6, %v472_v15, %v473_v16  ;;  %v488_v24 = vpop.permute.xlu0 %487 }
 0x12d   : > { %477 = vst.msk [vmem:[#allocation2 + $0x17] ss:$8 sm:$0x3] %vm1159_vm0, %v474_v23  ;;  %v489_v25 = vrot.slane %v488_v24, 1 }
 0x12f   : > { %v490_v26 = vsel %vm1573_vm7, %v488_v24, %v489_v25 }
 0x130   : > { %493 = vst.msk [vmem:[#allocation2 + $0x20] ss:$8 sm:$0x3] %vm1159_vm0, %v490_v26  ;;  %v551_v2 = vpop.permute.xlu1 %550 }
 0x131   : > { %v528_v21 = vpop.permute.xlu0 %527  ;;  %v552_v28 = vrot.slane %v551_v2, 1 }
 0x132   : > { %v529_v27 = vrot.slane %v528_v21, 1 }
 0x133   : > { %v553_v18 = vsel %vm1574_vm8, %v551_v2, %v552_v28 }
 0x134   : > { %v530_v30 = vsel %vm295_vm5, %v528_v21, %v529_v27  ;;  %v656_v31 = vld [vmem:[#allocation2 + $0x18] sm:$0xff]  ;;  %v655_v33 = vld [vmem:[#allocation2 + $0x10] sm:$0xff]  ;;  %556 = vst.msk [vmem:[#allocation2 + $0x23] ss:$8 sm:$0x3] %vm1159_vm0, %v553_v18  ;;  %v583_v35 = vpop.permute.xlu1 %582  ;;  %vm1575_vm5 = vcmask 801792  }
 0x135   : > { %533 = vst.msk [vmem:[#allocation2 + $0x22] ss:$8 sm:$0x3] %vm1159_vm0, %v530_v30  ;;  %v567_v34 = vpop.permute.xlu0 %566  ;;  %v914_v20 = vpack.c.bf16 %v656_v31, %v654_v29  ;;  %v916_v36 = vpack.c.bf16 %v655_v33, %v653_v32  ;;  %v584_v37 = vrot.slane %v583_v35, 1 }
 0x136   : > { %v568_v7 = vrot.slane %v567_v34, 1 }
 0x137   : > { %915 = vmatprep.subr.bf16.mxu0 %v914_v20  ;;  %922 = vmatprep.subr.bf16.mxu1 %v914_v20  ;;  %v585_v39 = vsel %vm1576_vm9, %v583_v35, %v584_v37 }
 0x138   : > { %v569_v38 = vsel %vm1575_vm5, %v567_v34, %v568_v7  ;;  %917 = vmatpush1.bf16.msra.mxu0 %v916_v36  ;;  %924 = vmatpush1.bf16.msra.mxu1 %v916_v36  ;;  %588 = vst.msk [vmem:[#allocation2 + $0x25] ss:$8 sm:$0x3] %vm1159_vm0, %v585_v39 }
 0x139   : > { %572 = vst.msk [vmem:[#allocation2 + $0x24] ss:$8 sm:$0x3] %vm1159_vm0, %v569_v38  ;;  %v625_v40 = vpop.permute.xlu0 %624  ;;  %v609_v41 = vpop.permute.xlu1 %608 }
 0x13a   : > { %v626_v42 = vrot.slane %v625_v40, 1  ;;  %v610_v43 = vrot.slane %v609_v41, 1 }
 0x13c   : > { %v627_v44 = vsel %vm1577_vm10, %v625_v40, %v626_v42  ;;  %v611_v45 = vsel %vm1578_vm11, %v609_v41, %v610_v43 }
 0x13d   : > { %630 = vst.msk [vmem:[#allocation2 + $0x30] ss:$8 sm:$0x3] %vm1159_vm0, %v627_v44  ;;  %614 = vst.msk [vmem:[#allocation2 + $0x27] ss:$8 sm:$0x3] %vm1159_vm0, %v611_v45  ;;  %v641_v46 = vpop.permute.xlu1 %640 }
 0x13e   : > { %v642_v17 = vrot.slane %v641_v46, 1 }
 0x140   : > { %v643_v47 = vsel %vm303_vm3, %v641_v46, %v642_v17 }
 0x141   : > { %646 = vst.msk [vmem:[#allocation2 + $0x31] ss:$8 sm:$0x3] %vm1159_vm0, %v643_v47 }
 0x144   : > { %v658_v48 = vld [vmem:[#allocation2 + $0x28] sm:$0xff]  ;;  %v657_v50 = vld [vmem:[#allocation2 + $0x20] sm:$0xff] }
 0x148   : > { %v660_v49 = vld [vmem:[#allocation2 + $0x38] sm:$0xff]  ;;  %v659_v51 = vld [vmem:[#allocation2 + $0x30] sm:$0xff] }
 0x149   : > { %v918_v6 = vpack.c.bf16 %v660_v49, %v658_v48  ;;  %v920_v52 = vpack.c.bf16 %v659_v51, %v657_v50 }
 0x14b   : > { %919 = vmatprep.subr.bf16.mxu0 %v918_v6  ;;  %923 = vmatprep.subr.bf16.mxu1 %v918_v6 }
 0x14c   : > { %921 = vmatpush1.bf16.msra.mxu0 %v920_v52  ;;  %925 = vmatpush1.bf16.msra.mxu1 %v920_v52 }
 0x14f   : > { %900 = vmatmul.mubr.msk.f32.vlgmr.msra.gmra.mrb[0].mxu0 %vm229_vm1, %v175_v53  ;;  %904 = vmatmul.mubr.msk.f32.vlgmr.msra.gmra.mrb[0].mxu1 %vm229_vm1, %v179_v54 }
 0x150   : > { %755 = vmatprep.mubr.f32.mxu0 %v1081_v10  ;;  %779 = vmatprep.mubr.f32.mxu1 %v1081_v10 }
 0x153   : > { %901 = vmatmul.mubr.msk.f32.gmra.mrb[2].mxu0 %vm229_vm1, %v176_v1  ;;  %905 = vmatmul.mubr.msk.f32.gmra.mrb[2].mxu1 %vm229_vm1, %v180_v19 }
 0x154   : > { %761 = vmatprep.mubr.f32.mxu0 %v1081_v10  ;;  %785 = vmatprep.mubr.f32.mxu1 %v1081_v10 }
 0x157   : > { %902 = vmatmul.mubr.msk.f32.gmra.mrb[4].mxu0 %vm229_vm1, %v177_v55  ;;  %906 = vmatmul.mubr.msk.f32.gmra.mrb[4].mxu1 %vm229_vm1, %v181_v56 }
 0x158   : > { %767 = vmatprep.mubr.f32.mxu0 %v1081_v10  ;;  %791 = vmatprep.mubr.f32.mxu1 %v1081_v10 }
 0x15b   : > { %903 = vmatmul.mubr.msk.f32.gmra.mrb[6].mxu0 %vm229_vm1, %v178_v57  ;;  %907 = vmatmul.mubr.msk.f32.gmra.mrb[6].mxu1 %vm229_vm1, %v182_v58 }
 0x222   : > { %v751_v59 = vpop.f32.mrb[0].mxu0  ;;  %v775_v60 = vpop.f32.mrb[0].mxu1 }
 0x223   : > { %798 = vst [vmem:[%s1464_s9] sm:$0xff] %v751_v59  ;;  %806 = vst [vmem:[%s1464_s9 + $0x40] sm:$0xff] %v775_v60  ;;  %v753_v10 = vpop.f32.mrb[1].mxu0  ;;  %v777_v61 = vpop.f32.mrb[1].mxu1 }
 0x224   : > { %799 = vst [vmem:[%s1464_s9 + $0x8] sm:$0xff] %v753_v10  ;;  %807 = vst [vmem:[%s1464_s9 + $0x48] sm:$0xff] %v777_v61 }
 0x226   : > { %v757_v62 = vpop.f32.mrb[2].mxu0  ;;  %v781_v63 = vpop.f32.mrb[2].mxu1 }
 0x227   : > { %800 = vst [vmem:[%s1464_s9 + $0x10] sm:$0xff] %v757_v62  ;;  %808 = vst [vmem:[%s1464_s9 + $0x50] sm:$0xff] %v781_v63  ;;  %v759_v13 = vpop.f32.mrb[3].mxu0  ;;  %v783_v0 = vpop.f32.mrb[3].mxu1 }
 0x228   : > { %801 = vst [vmem:[%s1464_s9 + $0x18] sm:$0xff] %v759_v13  ;;  %809 = vst [vmem:[%s1464_s9 + $0x58] sm:$0xff] %v783_v0 }
 0x22a   : > { %v763_v3 = vpop.f32.mrb[4].mxu0  ;;  %v787_v22 = vpop.f32.mrb[4].mxu1 }
 0x22b   : > { %802 = vst [vmem:[%s1464_s9 + $0x20] sm:$0xff] %v763_v3  ;;  %810 = vst [vmem:[%s1464_s9 + $0x60] sm:$0xff] %v787_v22  ;;  %v765_v4 = vpop.f32.mrb[5].mxu0  ;;  %v789_v8 = vpop.f32.mrb[5].mxu1 }
 0x22c   : > { %803 = vst [vmem:[%s1464_s9 + $0x28] sm:$0xff] %v765_v4  ;;  %811 = vst [vmem:[%s1464_s9 + $0x68] sm:$0xff] %v789_v8 }
 0x22e   : > { %v769_v9 = vpop.f32.mrb[6].mxu0  ;;  %v793_v5 = vpop.f32.mrb[6].mxu1 }
 0x22f   : > { %804 = vst [vmem:[%s1464_s9 + $0x30] sm:$0xff] %v769_v9  ;;  %812 = vst [vmem:[%s1464_s9 + $0x70] sm:$0xff] %v793_v5  ;;  %v771_v11 = vpop.f32.mrb[7].mxu0  ;;  %v795_v12 = vpop.f32.mrb[7].mxu1 }
 0x230   : > { %805 = vst [vmem:[%s1464_s9 + $0x38] sm:$0xff] %v771_v11  ;;  %813 = vst [vmem:[%s1464_s9 + $0x78] sm:$0xff] %v795_v12 }
 0x231   : > { %1005 = shalt.err (!%p1002_p3)
}
 0x232   : > { %s1006_s7 = scalar_lea.hbm %s1483_s25, 2048  ;;  %s1010_s19 = scalar_lea.hbm %s1538_s3, 4096 }
 0x233   : > { %p1007_p4 = scmp.ne.s32.totalorder %s1483_s25, %s1006_s7  ;;  %p1011_p9 = scmp.lt.u32.totalorder %s1483_s25, %s1538_s3 }
 0x234   : > { %p1012_p10 = scmp.lt.u32.totalorder %s1010_s19, %s1006_s7  ;;  %p1014_p12 = scmp.lt.u32.totalorder %s1006_s7, %s1483_s25 }
 0x235   : > { %p1008_p7 = pnand %p1007_p4, %p1142_p5 }
 0x236   : > { %p1013_p11 = por %p1012_p10, %p1011_p9 }
 0x237   : > { %p1009_p8 = pneg %p1008_p7 }
 0x238   : > { %p1015_p13 = por %p1014_p12, %p1013_p11 }
 0x23a   : > { %p1016_p0 = pnand %p1015_p13, %p1009_p8 }
 0x23c   : > { %1019 = shalt.err (!%p1016_p0)
}
 0x23d   : > { %s1083_s8 = smov 256  }
 0x23e   : > { %926 = dma.vmem_to_hbm [thread:$0]  (%p1142_p5), %s1485_s11, 2048, %s1483_s25, %s1493_s16, %s1083_s8, %s1083_s8, %s1079_s5  }
 0x23f PF: > { %p932_p1 = scmp.ge.s32.totalorder %s1054_s15, 2  ;;  %s843_s9 = sand.u32 1, %s1042_s12  }
 0x240   : > { %s844_s10 = scalar_lea.sflag [#allocation4], %s843_s9 }
 0x241   : > { %p929_p2 = pnand %p932_p1, %p1146_p6 }
 0x243   : > { %1037 = dma.done.wait (!%p929_p2), %s844_s10, 2048  }
 0x244   : > { %1039 = vsyncadd (!%p929_p2), %s844_s10, 4294965248  ;;  %p13_p3 = scmp.ge.s32.totalorder %s1129_s18, 4   ;;  %s1579_s12 = smov %s1046_s13 }
 0x245   : > { %s1580_s13 = smov %s1050_s14  ;;  %s1581_s14 = smov %s1140_s21 }
 0x246   : > { %s1582_s15 = smov %s1129_s18  ;;  %15 = sbr.rel (!%p13_p3) target bundleno = 3 (0x3), region = 97 }
 0x24d   :  { %849 = vsyncpa [#allocation4], 1 }
 0x24e   :  { %851 = vsyncpa [#allocation4 + $0x1], 1 }

</bundles_post_ra>
